<compile_context>
chip_gen: v7x
topology: tpu7x:2x2x1
jax: 0.10.0
libtpu: 0.0.40
codegen_flags: <defaults>
</compile_context>

<pallas_src>
import functools

import jax
import jax.numpy as jnp
from jax.experimental import pallas as pl
from jax.experimental.pallas import tpu as pltpu

EPS = 1e-7


def _oks_kernel(*refs, K, has_weight, want_elem, want_psum, want_cnt):
    """One lane-dense tile of the OKS loss.

    Ref order (all last dims == TILE_N, a multiple of 128):
      p_ref    : (2K, TN)  pred plane   (rows 0..K-1 = x, rows K..2K-1 = y)
      t_ref    : (2K, TN)  target plane (same row layout)
      s_ref    : (1, TN)   inv_scale = 1/(bbox_w*bbox_h + eps); 0 in pad cols
      w_ref    : (K, TN)   [has_weight] elementwise weight; 0 in pad cols
      loss_ref : (K, TN)   [want_elem]  elementwise (weighted) loss
      psum_ref : (1, TN)   [want_psum]  per-lane (sublane-reduced) loss sums
      cnt_ref  : (1, TN)   [want_cnt]   per-lane counts of (weight > 0)
    """
    idx = 3
    p_ref, t_ref, s_ref = refs[0], refs[1], refs[2]
    if has_weight:
        w_ref = refs[idx]; idx += 1
    if want_elem:
        loss_ref = refs[idx]; idx += 1
    if want_psum:
        psum_ref = refs[idx]; idx += 1
    if want_cnt:
        cnt_ref = refs[idx]; idx += 1

    dx = p_ref[:K, :].astype(jnp.float32) - t_ref[:K, :].astype(jnp.float32)
    dy = p_ref[K:, :].astype(jnp.float32) - t_ref[K:, :].astype(jnp.float32)
    dis = dx * dx + dy * dy                                  # (K, TN)

    # 1 - exp(-dis/(scale+eps))**2  ==  1 - exp(-2*dis*inv_scale); the missing
    # explicit square is intentional (folded into the exponent).
    loss = 1.0 - jnp.exp(dis * (-2.0) * s_ref[...])          # (1,TN) bcasts over K

    if has_weight:
        w = w_ref[...].astype(jnp.float32)
        loss = loss * w
        if want_cnt:
            cnt_ref[...] = jnp.sum((w > 0).astype(jnp.float32),
                                   axis=0, keepdims=True)

    if want_elem:
        loss_ref[...] = loss.astype(loss_ref.dtype)
    if want_psum:
        # Sublane-only reduction; the cheap cross-lane sum of the tiny (1, N_pad)
        # row happens once in the wrapper.
        psum_ref[...] = jnp.sum(loss, axis=0, keepdims=True)


def _round_up(x, m):
    return (x + m - 1) // m * m


@functools.partial(
    jax.jit,
    static_argnames=("reduction", "loss_weight", "weight_is_per_instance"))
def _oks_forward(pred, kpts_targets, bbox_targets, weight, avg_factor, *,
                 reduction, loss_weight, weight_is_per_instance):
    N, two_k = pred.shape
    K = two_k // 2
    has_weight = weight is not None
    want_elem = reduction == "none"
    want_psum = not want_elem
    want_cnt = has_weight and reduction == "mean"

    if has_weight and reduction == "sum":
        # torch forward() sets avg_factor=(weight>0).sum(), which mmdet's
        # weight_reduce_loss rejects for reduction='sum'.
        raise ValueError('avg_factor can not be used with reduction="sum"')

    # ---- lane-dense tiling --------------------------------------------------
    # N maps to the 128-lane axis.  Tiles are multiples of 128, capped at 8192
    # lanes (double-buffered worst case ~10 MB -> safe within every
    # generation's scoped VMEM default), and the tile is chosen so the grid has
    # >= 2 steps whenever N allows, letting the "parallel" axis shard across
    # both TensorCores on v7x.
    n128 = _round_up(max(N, 1), 128)
    num_tiles = max(1, pl.cdiv(n128, 8192))
    if n128 >= 256:
        num_tiles = max(num_tiles, 2)
    tile_n = _round_up(pl.cdiv(n128, num_tiles), 128)
    n_pad = num_tiles * tile_n
    pad = n_pad - N

    def to_plane(a):                              # (N, 2K) -> (2K, N_pad)
        a = a.reshape(N, K, 2)
        a = jnp.transpose(a, (2, 1, 0)).reshape(2 * K, N)   # [x rows; y rows]
        if pad:
            a = jnp.pad(a, ((0, 0), (0, pad)))
        return a

    p = to_plane(pred)            # keeps incoming dtype; cast happens in-kernel
    t = to_plane(kpts_targets)

    # prod of last two bbox columns, inverted once per row in the wrapper.
    scale = (bbox_targets[:, 2] * bbox_targets[:, 3]).astype(jnp.float32)
    inv_scale = (1.0 / (scale + EPS))[None, :]               # (1, N)
    if pad:
        inv_scale = jnp.pad(inv_scale, ((0, 0), (0, pad)))   # pad cols -> 0 loss

    args = [p, t, inv_scale]
    in_specs = [
        pl.BlockSpec((2 * K, tile_n), lambda i: (0, i)),
        pl.BlockSpec((2 * K, tile_n), lambda i: (0, i)),
        pl.BlockSpec((1, tile_n), lambda i: (0, i)),
    ]

    if has_weight:
        w2d = weight
        if w2d.ndim == 1:
            w2d = w2d[:, None]
        w2d = jnp.broadcast_to(w2d, (N, K)).T                # (K, N)
        if pad:
            w2d = jnp.pad(w2d, ((0, 0), (0, pad)))
        args.append(w2d)
        in_specs.append(pl.BlockSpec((K, tile_n), lambda i: (0, i)))

    out_shape, out_specs = [], []
    if want_elem:
        out_shape.append(jax.ShapeDtypeStruct((K, n_pad), pred.dtype))
        out_specs.append(pl.BlockSpec((K, tile_n), lambda i: (0, i)))
    if want_psum:
        out_shape.append(jax.ShapeDtypeStruct((1, n_pad), jnp.float32))
        out_specs.append(pl.BlockSpec((1, tile_n), lambda i: (0, i)))
    if want_cnt:
        out_shape.append(jax.ShapeDtypeStruct((1, n_pad), jnp.float32))
        out_specs.append(pl.BlockSpec((1, tile_n), lambda i: (0, i)))

    kernel = functools.partial(_oks_kernel, K=K, has_weight=has_weight,
                               want_elem=want_elem, want_psum=want_psum,
                               want_cnt=want_cnt)

    outs = pl.pallas_call(
        kernel,
        out_shape=tuple(out_shape),
        grid=(num_tiles,),
        in_specs=in_specs,
        out_specs=tuple(out_specs),
        compiler_params=pltpu.CompilerParams(
            # No cross-step state -> grid axis shards across both TCs on v7x.
            dimension_semantics=("parallel",),
        ),
    )(*args)

    if not isinstance(outs, (list, tuple)):
        outs = (outs,)
    outs = list(outs)

    i = 0
    elem = total = count = None
    if want_elem:
        elem = outs[i]; i += 1
    if want_psum:
        total = jnp.sum(outs[i]); i += 1
    if want_cnt:
        count = jnp.sum(outs[i]); i += 1
        if weight_is_per_instance:
            # kernel counted the (N,1)/(N,) weight broadcast over K rows.
            count = count / K

    # ---- mmdet weight_reduce_loss semantics ---------------------------------
    if reduction == "none":
        loss = elem[:, :N].T                       # back to torch's (N, K)
    elif has_weight:
        # forward() overrides avg_factor with (weight > 0).sum(); like torch,
        # an all-zero weight yields inf/NaN here (no clamping added).
        loss = total / count
    elif avg_factor is None:
        loss = total / (N * K) if reduction == "mean" else total
    else:
        if reduction == "mean":
            loss = total / avg_factor
        else:
            raise ValueError('avg_factor can not be used with reduction="sum"')

    return loss_weight * loss


class OKSLossPallas:
    """JAX/Pallas equivalent of megacv OKSLoss (forward only, no parameters)."""

    def __init__(self, reduction="mean", loss_weight=1.0):
        self.reduction = reduction
        self.loss_weight = float(loss_weight)

    def __call__(self, pred, target, weight=None, avg_factor=None,
                 reduction_override=None):
        assert reduction_override in (None, "none", "mean", "sum")
        reduction = reduction_override if reduction_override else self.reduction
        kpts_targets, bbox_targets = target
        wpi = weight is not None and (weight.ndim == 1 or weight.shape[-1] == 1)
        return _oks_forward(pred, kpts_targets, bbox_targets, weight, avg_factor,
                            reduction=reduction, loss_weight=self.loss_weight,
                            weight_is_per_instance=wpi)


def _reference_oks_elem(pred, kpts_targets, bbox_targets, eps=EPS):
    px, tx = pred[:, 0::2], kpts_targets[:, 0::2]
    py, ty = pred[:, 1::2], kpts_targets[:, 1::2]
    dis = (px - tx) ** 2 + (py - ty) ** 2
    scale = jnp.prod(bbox_targets[:, -2:], axis=1, keepdims=True)
    oks = jnp.exp(-dis / (scale + eps))
    return 1.0 - oks ** 2


if __name__ == "__main__":
    key = jax.random.PRNGKey(0)
    k1, k2, k3, k4, k5 = jax.random.split(key, 5)

    N, K = 16, 8  # 16 instances, 8 keypoints -> pred is (16, 16)
    pred = jax.random.normal(k1, (N, 2 * K), jnp.float32)
    kpts_t = jax.random.normal(k2, (N, 2 * K), jnp.float32)
    bbox_t = jnp.abs(jax.random.normal(k3, (N, 4), jnp.float32)) + 0.5
    weight = (jax.random.uniform(k4, (N, K)) > 0.3).astype(jnp.float32)
    w_inst = (jax.random.uniform(k5, (N, 1)) > 0.3).astype(jnp.float32)

    module = OKSLossPallas(reduction="mean", loss_weight=1.0)

    out_w = module(pred, (kpts_t, bbox_t), weight=weight)            # weighted mean
    out_wi = module(pred, (kpts_t, bbox_t), weight=w_inst)           # per-inst weight
    out_m = module(pred, (kpts_t, bbox_t))                           # plain mean
    out_s = module(pred, (kpts_t, bbox_t), reduction_override="sum")
    out_n = module(pred, (kpts_t, bbox_t), reduction_override="none")
    out_nw = module(pred, (kpts_t, bbox_t), weight=weight,
                    reduction_override="none")
    out_af = module(pred, (kpts_t, bbox_t), avg_factor=37.0)         # mean/avg_factor

    jax.block_until_ready((out_w, out_wi, out_m, out_s, out_n, out_nw, out_af))

    # reference (pure JAX mirror of the torch code)
    ref_elem = _reference_oks_elem(pred, kpts_t, bbox_t)
    ref_w = (ref_elem * weight).sum() / (weight > 0).sum()
    ref_wi = (ref_elem * w_inst).sum() / (w_inst > 0).sum()
    ref_m = ref_elem.mean()
    ref_s = ref_elem.sum()
    ref_af = ref_elem.sum() / 37.0

    assert jnp.allclose(out_w, ref_w, rtol=1e-5, atol=1e-5)
    assert jnp.allclose(out_wi, ref_wi, rtol=1e-5, atol=1e-5)
    assert jnp.allclose(out_m, ref_m, rtol=1e-5, atol=1e-5)
    assert jnp.allclose(out_s, ref_s, rtol=1e-5, atol=1e-5)
    assert jnp.allclose(out_af, ref_af, rtol=1e-5, atol=1e-5)
    assert out_n.shape == (N, K)
    assert jnp.allclose(out_n, ref_elem, rtol=1e-5, atol=1e-5)
    assert out_nw.shape == (N, K)
    assert jnp.allclose(out_nw, ref_elem * weight, rtol=1e-5, atol=1e-5)

    print("KERNEL_OK")
</pallas_src>

<mosaic_0001>
module attributes {stable_mosaic.version = 11 : i64} {
  func.func @_oks_kernel(%arg0: i32, %arg1: memref<16x128xf32, #tpu.memory_space<vmem>>, %arg2: memref<16x128xf32, #tpu.memory_space<vmem>>, %arg3: memref<1x128xf32, #tpu.memory_space<vmem>>, %arg4: memref<8x128xf32, #tpu.memory_space<vmem>>, %arg5: memref<1x128xf32, #tpu.memory_space<vmem>>, %arg6: memref<1x128xf32, #tpu.memory_space<vmem>>) attributes {dimension_semantics = [#tpu.dimension_semantics<parallel>], iteration_bounds = array<i64: 1>, scalar_prefetch = 0 : i64, scratch_operands = 0 : i64, tpu.core_type = #tpu.core_type<tc>, window_params = [{transform_indices = @transform_0, window_bounds = array<i64: 16, 128>}, {transform_indices = @transform_1, window_bounds = array<i64: 16, 128>}, {transform_indices = @transform_2, window_bounds = array<i64: 1, 128>}, {transform_indices = @transform_3, window_bounds = array<i64: 8, 128>}, {transform_indices = @transform_4, window_bounds = array<i64: 1, 128>}, {transform_indices = @transform_5, window_bounds = array<i64: 1, 128>}]} {
    %c0 = arith.constant 0 : index
    %c0_0 = arith.constant 0 : index
    %0 = vector.load %arg1[%c0, %c0_0] : memref<16x128xf32, #tpu.memory_space<vmem>>, vector<8x128xf32>
    %c0_1 = arith.constant 0 : index
    %c0_2 = arith.constant 0 : index
    %1 = vector.load %arg2[%c0_1, %c0_2] : memref<16x128xf32, #tpu.memory_space<vmem>>, vector<8x128xf32>
    %2 = arith.subf %0, %1 : vector<8x128xf32>
    %c8 = arith.constant 8 : index
    %c0_3 = arith.constant 0 : index
    %3 = vector.load %arg1[%c8, %c0_3] : memref<16x128xf32, #tpu.memory_space<vmem>>, vector<8x128xf32>
    %c8_4 = arith.constant 8 : index
    %c0_5 = arith.constant 0 : index
    %4 = vector.load %arg2[%c8_4, %c0_5] : memref<16x128xf32, #tpu.memory_space<vmem>>, vector<8x128xf32>
    %5 = arith.subf %3, %4 : vector<8x128xf32>
    %6 = arith.mulf %2, %2 : vector<8x128xf32>
    %7 = arith.mulf %5, %5 : vector<8x128xf32>
    %8 = arith.addf %6, %7 : vector<8x128xf32>
    %cst = arith.constant -2.000000e+00 : f32
    %9 = vector.broadcast %cst : f32 to vector<8x128xf32>
    %10 = arith.mulf %8, %9 : vector<8x128xf32>
    %c0_6 = arith.constant 0 : index
    %c0_7 = arith.constant 0 : index
    %11 = vector.load %arg3[%c0_6, %c0_7] : memref<1x128xf32, #tpu.memory_space<vmem>>, vector<1x128xf32>
    %12 = vector.broadcast %11 : vector<1x128xf32> to vector<8x128xf32>
    %13 = arith.mulf %10, %12 : vector<8x128xf32>
    %14 = math.exp %13 : vector<8x128xf32>
    %cst_8 = arith.constant 1.000000e+00 : f32
    %15 = vector.broadcast %cst_8 : f32 to vector<8x128xf32>
    %16 = arith.subf %15, %14 : vector<8x128xf32>
    %c0_9 = arith.constant 0 : index
    %c0_10 = arith.constant 0 : index
    %17 = vector.load %arg4[%c0_9, %c0_10] : memref<8x128xf32, #tpu.memory_space<vmem>>, vector<8x128xf32>
    %18 = arith.mulf %16, %17 : vector<8x128xf32>
    %cst_11 = arith.constant 0.000000e+00 : f32
    %19 = vector.broadcast %cst_11 : f32 to vector<8x128xf32>
    %20 = arith.cmpf ogt, %17, %19 : vector<8x128xf32>
    %21 = arith.extui %20 : vector<8x128xi1> to vector<8x128xi32>
    %22 = arith.sitofp %21 : vector<8x128xi32> to vector<8x128xf32>
    %cst_12 = arith.constant dense<0.000000e+00> : vector<128xf32>
    %23 = vector.multi_reduction <add>, %22, %cst_12 [0] : vector<8x128xf32> to vector<128xf32>
    %24 = vector.shape_cast %23 : vector<128xf32> to vector<1x128xf32>
    %c0_13 = arith.constant 0 : index
    %c0_14 = arith.constant 0 : index
    %25 = vector.load %arg6[%c0_13, %c0_14] : memref<1x128xf32, #tpu.memory_space<vmem>>, vector<1x128xf32>
    tpu.vector_store %arg6[%c0_13, %c0_14], %24 {strides = array<i32>} : memref<1x128xf32, #tpu.memory_space<vmem>>, vector<1x128xf32>,
    %cst_15 = arith.constant dense<0.000000e+00> : vector<128xf32>
    %26 = vector.multi_reduction <add>, %18, %cst_15 [0] : vector<8x128xf32> to vector<128xf32>
    %27 = vector.shape_cast %26 : vector<128xf32> to vector<1x128xf32>
    %c0_16 = arith.constant 0 : index
    %c0_17 = arith.constant 0 : index
    %28 = vector.load %arg5[%c0_16, %c0_17] : memref<1x128xf32, #tpu.memory_space<vmem>>, vector<1x128xf32>
    tpu.vector_store %arg5[%c0_16, %c0_17], %27 {strides = array<i32>} : memref<1x128xf32, #tpu.memory_space<vmem>>, vector<1x128xf32>,
    return
  }
  func.func @transform_0(%arg0: i32) -> (i32, i32) {
    %c0_i32 = arith.constant 0 : i32
    %c0_i32_0 = arith.constant 0 : i32
    return %c0_i32, %arg0 : i32, i32
  }
  func.func @transform_1(%arg0: i32) -> (i32, i32) {
    %c0_i32 = arith.constant 0 : i32
    %c0_i32_0 = arith.constant 0 : i32
    return %c0_i32, %arg0 : i32, i32
  }
  func.func @transform_2(%arg0: i32) -> (i32, i32) {
    %c0_i32 = arith.constant 0 : i32
    %c0_i32_0 = arith.constant 0 : i32
    return %c0_i32, %arg0 : i32, i32
  }
  func.func @transform_3(%arg0: i32) -> (i32, i32) {
    %c0_i32 = arith.constant 0 : i32
    %c0_i32_0 = arith.constant 0 : i32
    return %c0_i32, %arg0 : i32, i32
  }
  func.func @transform_4(%arg0: i32) -> (i32, i32) {
    %c0_i32 = arith.constant 0 : i32
    %c0_i32_0 = arith.constant 0 : i32
    return %c0_i32, %arg0 : i32, i32
  }
  func.func @transform_5(%arg0: i32) -> (i32, i32) {
    %c0_i32 = arith.constant 0 : i32
    %c0_i32_0 = arith.constant 0 : i32
    return %c0_i32, %arg0 : i32, i32
  }
}

</mosaic_0001>

<bundles_post_ra>
// kernel: _oks_forward.1
= control target key start
LH: loop header
LB: loop body
LE: loop exit
PB: predicated region body
PF: predicated region fallthrough
CT: control target
= control target key end

     0   :  { %v72_v6 = vmov 0.0   ;;  %s127_s3 = inlined_call_operand.vmem [shape: f32[8,128], index: 3, kind: input, shape index: {}]   ;;  %s128_s0 = inlined_call_operand.vmem [shape: f32[16,128], index: 0, kind: input, shape index: {}]   ;;  %s129_s1 = inlined_call_operand.vmem [shape: f32[16,128], index: 1, kind: input, shape index: {}]   ;;  %s130_s2 = inlined_call_operand.vmem [shape: f32[1,128], index: 2, kind: input, shape index: {}]   ;;  %s131_s5 = inlined_call_operand.vmem [shape: f32[1,128], index: 5, kind: output, shape index: {1}]   ;;  %s132_s4 = inlined_call_operand.vmem [shape: f32[1,128], index: 4, kind: output, shape index: {0}]  }
   0x1   :  { %v40_v0 = vld [vmem:[%s127_s3] sm:$0xff]  ;;  %v22_v4 = vld [vmem:[%s128_s0 + $0x8] sm:$0xff] }
   0x2   :  { %v19_v1 = vld [vmem:[%s128_s0] sm:$0xff]  ;;  %vm42_vm0 = vcmp.gt.f32.partialorder %v40_v0, 0.0  ;;  %v23_v5 = vld [vmem:[%s129_s1 + $0x8] sm:$0xff] }
   0x3   :  { %v20_v2 = vld [vmem:[%s129_s1] sm:$0xff]  ;;  %v68_v7 = vsel %vm42_vm0, 1.0, %v72_v6  ;;  %v24_v8 = vsub.f32 %v22_v4, %v23_v5 }
   0x4   :  { %v21_v3 = vsub.f32 %v19_v1, %v20_v2  ;;  %v45_v9 = vrot.slane %v68_v7, 4  ;;  %v67_v15 = vld [vmem:[%s130_s2] ss:$0 sm:$0xff] }
   0x5   :  { %v26_v11 = vmul.f32 %v24_v8, %v24_v8 }
   0x6   :  { %v25_v10 = vmul.f32 %v21_v3, %v21_v3  ;;  %v46_v12 = vadd.f32 %v68_v7, %v45_v9 }
   0x8   :  { %v27_v13 = vadd.f32 %v26_v11, %v25_v10  ;;  %v47_v14 = vrot.slane %v46_v12, 2 }
   0xa   :  { %v28_v16 = vmul.f32 -2.0, %v27_v13  ;;  %v48_v17 = vadd.f32 %v47_v14, %v46_v12 }
   0xc   :  { %v36_v18 = vmul.f32 %v67_v15, %v28_v16  ;;  %v49_v19 = vrot.slane %v48_v17, 1 }
   0xe   :  { %v37_v20 = vmul.f32 1.442695, %v36_v18  ;;  %v50_v21 = vadd.f32 %v49_v19, %v48_v17 }
  0x10   :  { %70 = vpow2.f32 %v37_v20  ;;  %51 = vst [vmem:[%s131_s5] sm:$0x1] %v50_v21 }
  0x1a   :  { %v71_v22 = vpop.eup %70 }
  0x1b   :  { %v39_v23 = vsub.f32 1.0, %v71_v22 }
  0x1d   :  { %v41_v24 = vmul.f32 %v40_v0, %v39_v23 }
  0x1f   :  { %v52_v25 = vrot.slane %v41_v24, 4 }
  0x21   :  { %v53_v26 = vadd.f32 %v52_v25, %v41_v24 }
  0x23   :  { %v54_v27 = vrot.slane %v53_v26, 2 }
  0x25   :  { %v55_v28 = vadd.f32 %v54_v27, %v53_v26 }
  0x27   :  { %v56_v29 = vrot.slane %v55_v28, 1 }
  0x29   :  { %v57_v30 = vadd.f32 %v56_v29, %v55_v28 }
  0x2b   :  { %58 = vst [vmem:[%s132_s4] sm:$0x1] %v57_v30 }

</bundles_post_ra>
